<compile_context>
chip_gen: v7x
topology: tpu7x:2x2x1
jax: 0.10.0
libtpu: 0.0.40
codegen_flags: <defaults>
</compile_context>

<pallas_src>
import jax
import jax.numpy as jnp
from jax.experimental import pallas as pl
from jax.experimental.pallas import tpu as pltpu


def _round_up(x, m):
    return (x + m - 1) // m * m


def _joint_out_kernel(encp_ref, decp_ref, wout_ref, bout_ref, out_ref):
    # encp_ref: (1, tT, J_p)  act dtype   decp_ref: (1, tU, J_p)  act dtype
    # wout_ref: (J_p, D_out_p) bf16       bout_ref: (1, D_out_p) f32
    # out_ref : (1, tT, tU, D_out)        out dtype (bf16 or f32)
    enc = encp_ref[0]                                     # (tT, J_p)
    dec = decp_ref[0]                                     # (tU, J_p)

    # Joint activation: broadcast add over (tT, tU) + tanh (EUP).  Runs in the
    # dtype the wrapper stored the projections in (bf16 on v6e/v7x, f32 on v5e).
    joint = jnp.tanh(enc[:, None, :] + dec[None, :, :])  # (tT, tU, J_p)
    tT, tU, J = joint.shape

    # Free sublane-merge reshape, then one MXU GEMM (bf16 in, f32 accumulate).
    joint2d = joint.reshape(tT * tU, J).astype(jnp.bfloat16)
    out = jnp.dot(joint2d, wout_ref[...],
                  preferred_element_type=jnp.float32)     # (tT*tU, D_out_p)
    out = out + bout_ref[...]                             # f32 bias add

    # Split the leading dim back (lane dim untouched -> free), drop the lane
    # padding so only real D_out bytes hit HBM, cast to the output dtype, store.
    d_out = out_ref.shape[-1]
    out3d = out.reshape(tT, tU, -1)                       # (tT, tU, D_out_p)
    out_ref[0] = out3d[:, :, :d_out].astype(out_ref.dtype)


def joint_network_forward(enc_out, dec_out, params, *, tile_t=32, tile_u=32,
                          act_dtype=jnp.bfloat16, out_dtype=jnp.bfloat16):
    """enc_out: (B, T, 1, D_enc), dec_out: (B, 1, U, D_dec) -> (B, T, U, D_out).

    act_dtype: dtype of the projected enc/dec tiles and the in-kernel add+tanh.
      bf16 halves input DMA and uses the bf16 VPU/EUP on v6e/v7x; pass
      jnp.float32 on v5e (no bf16 VPU/EUP).
    out_dtype: HBM logits dtype.  The kernel is writeback-bound everywhere, so
      bf16 is ~2x faster; pass jnp.float32 for exact module semantics.
    """
    w_enc_t, b_enc, w_dec_t, w_out_t, b_out = params
    B, T, _, D_enc = enc_out.shape
    _, _, U, D_dec = dec_out.shape
    J = w_enc_t.shape[1]
    D_out = w_out_t.shape[1]

    # ---- Hoisted thin-K projections: f32 XLA GEMMs done once per element,
    # then stored in act_dtype to halve the per-tile DMA bytes.
    enc3 = enc_out.reshape(B, T, D_enc).astype(jnp.float32)
    dec3 = dec_out.reshape(B, U, D_dec).astype(jnp.float32)
    enc_proj = (jnp.einsum("btd,dj->btj", enc3, w_enc_t) + b_enc).astype(act_dtype)
    dec_proj = jnp.einsum("bud,dj->buj", dec3, w_dec_t).astype(act_dtype)

    # ---- Tile / pad geometry.
    # Tiles are multiples of 8 (sublane) and clamped to the rounded-up real
    # extents so small T/U pay no extra padding.  Defaults give
    # M = tT*tU = 1024 per grid step.  VMEM @ 32x32, J=256, bf16 activations:
    # joint ~0.5 MiB + f32 GEMM acc ~0.5 MiB + tiles/weights well under 1 MiB
    # even double-buffered -> fits v7x's 64 MiB with big headroom (and v5e/v6e's
    # 128 MiB); sweep up to 64x64 for large T/U, re-budgeting VMEM for v7x.
    tT = min(_round_up(T, 8), _round_up(tile_t, 8))
    tU = min(_round_up(U, 8), _round_up(tile_u, 8))
    T_p = _round_up(T, tT)
    U_p = _round_up(U, tU)
    J_p = _round_up(J, 128)           # lane-dense joint dim (MXU K)
    D_out_p = _round_up(D_out, 128)   # lane-dense GEMM N; HBM output stays D_out

    enc_proj = jnp.pad(enc_proj, ((0, 0), (0, T_p - T), (0, J_p - J)))
    dec_proj = jnp.pad(dec_proj, ((0, 0), (0, U_p - U), (0, J_p - J)))
    w_out_p = jnp.pad(w_out_t, ((0, J_p - J), (0, D_out_p - D_out))).astype(jnp.bfloat16)
    b_out_p = jnp.pad(b_out, (0, D_out_p - D_out)).reshape(1, D_out_p).astype(jnp.float32)

    # TODO(synk): for large vocab (D_out >= ~2k) add a D_out grid axis streaming
    # (J, ~512) W_out slices (single-buffered via pipeline_mode=pl.Buffered(1))
    # instead of keeping the whole W_out + full-D_out out tile resident in VMEM.

    grid = (B, T_p // tT, U_p // tU)
    # Megacore (v7x, 2 TCs): the "parallel" extent is B * (T_p // tT) >= 2 for
    # any B >= 2, so both TensorCores get work even with large tiles.

    out = pl.pallas_call(
        _joint_out_kernel,
        out_shape=jax.ShapeDtypeStruct((B, T_p, U_p, D_out), out_dtype),
        grid_spec=pltpu.PrefetchScalarGridSpec(
            num_scalar_prefetch=0,
            grid=grid,
            in_specs=[
                pl.BlockSpec((1, tT, J_p), lambda b, ti, ui: (b, ti, 0)),
                pl.BlockSpec((1, tU, J_p), lambda b, ti, ui: (b, ui, 0)),
                pl.BlockSpec((J_p, D_out_p), lambda b, ti, ui: (0, 0)),
                pl.BlockSpec((1, D_out_p), lambda b, ti, ui: (0, 0)),
            ],
            out_specs=pl.BlockSpec((1, tT, tU, D_out),
                                   lambda b, ti, ui: (b, ti, ui, 0)),
        ),
        compiler_params=pltpu.CompilerParams(
            dimension_semantics=("parallel", "parallel", "arbitrary"),
            # Default tiles need ~2 MiB double-buffered; 32 MiB keeps headroom
            # on v7x (64 MiB physical) while raising v5e's 16 MiB scoped
            # default — raise further on v5e/v6e when sweeping bigger tiles.
            vmem_limit_bytes=32 * 1024 * 1024,
        ),
    )(enc_proj, dec_proj, w_out_p, b_out_p)

    return out[:, :T, :U, :]


def joint_network_reference(enc_out, dec_out, params):
    w_enc_t, b_enc, w_dec_t, w_out_t, b_out = params
    enc_proj = jnp.einsum("btxd,dj->btxj", enc_out, w_enc_t) + b_enc
    dec_proj = jnp.einsum("bxud,dj->bxuj", dec_out, w_dec_t)
    joint = jnp.tanh(enc_proj + dec_proj)                  # (B, T, U, J)
    return jnp.einsum("btuj,jo->btuo", joint, w_out_t) + b_out


if __name__ == "__main__":
    # Small, module-consistent shapes (non-multiples of the tile to exercise padding).
    B, T, U = 2, 12, 10
    D_enc, D_dec = 32, 48
    J = 256            # joint_space_size (module default)
    D_out = 16         # output_size (vocab)

    key = jax.random.PRNGKey(0)
    k1, k2, k3, k4, k5, k6, k7 = jax.random.split(key, 7)

    enc_out = jax.random.normal(k1, (B, T, 1, D_enc), dtype=jnp.float32)
    dec_out = jax.random.normal(k2, (B, 1, U, D_dec), dtype=jnp.float32)

    # PyTorch Linear weight is (out, in); we store the transposed (in, out) form.
    w_enc_t = jax.random.normal(k3, (D_enc, J), dtype=jnp.float32) * (1.0 / jnp.sqrt(D_enc))
    b_enc = jax.random.normal(k4, (J,), dtype=jnp.float32) * 0.01
    w_dec_t = jax.random.normal(k5, (D_dec, J), dtype=jnp.float32) * (1.0 / jnp.sqrt(D_dec))
    w_out_t = jax.random.normal(k6, (J, D_out), dtype=jnp.float32) * (1.0 / jnp.sqrt(J))
    b_out = jax.random.normal(k7, (D_out,), dtype=jnp.float32) * 0.01

    params = (w_enc_t, b_enc, w_dec_t, w_out_t, b_out)
    ref = joint_network_reference(enc_out, dec_out, params)

    # Default (fast) path: bf16 activations + bf16 logits.
    fwd = jax.jit(joint_network_forward)
    out = jax.block_until_ready(fwd(enc_out, dec_out, params))
    assert out.shape == (B, T, U, D_out)
    assert out.dtype == jnp.bfloat16
    out_f = out.astype(jnp.float32)
    assert jnp.allclose(out_f, ref, atol=5e-2, rtol=5e-2), \
        f"max abs diff {jnp.max(jnp.abs(out_f - ref))}"

    # Full-precision path (exact module semantics; use on v5e / f32 logits).
    fwd_f32 = jax.jit(lambda e, d, p: joint_network_forward(
        e, d, p, act_dtype=jnp.float32, out_dtype=jnp.float32))
    out32 = jax.block_until_ready(fwd_f32(enc_out, dec_out, params))
    assert out32.dtype == jnp.float32
    assert jnp.allclose(out32, ref, atol=5e-2, rtol=5e-2), \
        f"max abs diff {jnp.max(jnp.abs(out32 - ref))}"

    print("KERNEL_OK")
</pallas_src>

<mosaic_0001>
module attributes {stable_mosaic.version = 11 : i64} {
  func.func @_joint_out_kernel(%arg0: i32, %arg1: i32, %arg2: i32, %arg3: memref<1x16x256xbf16, #tpu.memory_space<vmem>>, %arg4: memref<1x16x256xbf16, #tpu.memory_space<vmem>>, %arg5: memref<256x128xbf16, #tpu.memory_space<vmem>>, %arg6: memref<1x128xf32, #tpu.memory_space<vmem>>, %arg7: memref<1x16x16x16xbf16, #tpu.memory_space<vmem>>) attributes {dimension_semantics = [#tpu.dimension_semantics<parallel>, #tpu.dimension_semantics<parallel>, #tpu.dimension_semantics<arbitrary>], iteration_bounds = array<i64: 2, 1, 1>, scalar_prefetch = 0 : i64, scratch_operands = 0 : i64, tpu.core_type = #tpu.core_type<tc>, window_params = [{transform_indices = @transform_0, window_bounds = array<i64: 1, 16, 256>}, {transform_indices = @transform_1, window_bounds = array<i64: 1, 16, 256>}, {pipeline_mode = #tpu.pipeline_mode<synchronous>, transform_indices = @transform_2, window_bounds = array<i64: 256, 128>}, {pipeline_mode = #tpu.pipeline_mode<synchronous>, transform_indices = @transform_3, window_bounds = array<i64: 1, 128>}, {transform_indices = @transform_4, window_bounds = array<i64: 1, 16, 16, 16>}]} {
    %c0 = arith.constant 0 : index
    %c0_0 = arith.constant 0 : index
    %c0_1 = arith.constant 0 : index
    %0 = vector.load %arg3[%c0, %c0_0, %c0_1] : memref<1x16x256xbf16, #tpu.memory_space<vmem>>, vector<1x16x256xbf16>
    %1 = vector.shape_cast %0 : vector<1x16x256xbf16> to vector<16x256xbf16>
    %c0_2 = arith.constant 0 : index
    %c0_3 = arith.constant 0 : index
    %c0_4 = arith.constant 0 : index
    %2 = vector.load %arg4[%c0_2, %c0_3, %c0_4] : memref<1x16x256xbf16, #tpu.memory_space<vmem>>, vector<1x16x256xbf16>
    %3 = vector.shape_cast %2 : vector<1x16x256xbf16> to vector<16x256xbf16>
    %4 = vector.shape_cast %1 : vector<16x256xbf16> to vector<16x1x256xbf16>
    %5 = vector.shape_cast %3 : vector<16x256xbf16> to vector<1x16x256xbf16>
    %6 = vector.broadcast %4 : vector<16x1x256xbf16> to vector<16x16x256xbf16>
    %7 = vector.broadcast %5 : vector<1x16x256xbf16> to vector<16x16x256xbf16>
    %8 = arith.addf %6, %7 : vector<16x16x256xbf16>
    %9 = math.tanh %8 : vector<16x16x256xbf16>
    %10 = vector.shape_cast %9 : vector<16x16x256xbf16> to vector<256x256xbf16>
    %c0_5 = arith.constant 0 : index
    %c0_6 = arith.constant 0 : index
    %11 = vector.load %arg5[%c0_5, %c0_6] : memref<256x128xbf16, #tpu.memory_space<vmem>>, vector<256x128xbf16>
    %cst = arith.constant dense<0.000000e+00> : vector<256x128xf32>
    %12 = tpu.matmul %10, %11, %cst {dimension_numbers = #tpu.dot_dimension_numbers<[1], [0], [0], [1], [0, 0, 1, 1], [], []>} : vector<256x256xbf16>, vector<256x128xbf16>, vector<256x128xf32> -> vector<256x128xf32>
    %c0_7 = arith.constant 0 : index
    %c0_8 = arith.constant 0 : index
    %13 = vector.load %arg6[%c0_7, %c0_8] : memref<1x128xf32, #tpu.memory_space<vmem>>, vector<1x128xf32>
    %14 = vector.broadcast %13 : vector<1x128xf32> to vector<256x128xf32>
    %15 = arith.addf %12, %14 : vector<256x128xf32>
    %16 = vector.shape_cast %15 : vector<256x128xf32> to vector<16x16x128xf32>
    %17 = vector.extract_strided_slice %16 {offsets = [0, 0, 0], sizes = [16, 16, 16], strides = [1, 1, 1]} : vector<16x16x128xf32> to vector<16x16x16xf32>
    %18 = arith.truncf %17 : vector<16x16x16xf32> to vector<16x16x16xbf16>
    %c0_9 = arith.constant 0 : index
    %c0_10 = arith.constant 0 : index
    %c0_11 = arith.constant 0 : index
    %c0_12 = arith.constant 0 : index
    %19 = vector.load %arg7[%c0_9, %c0_10, %c0_11, %c0_12] : memref<1x16x16x16xbf16, #tpu.memory_space<vmem>>, vector<1x16x16x16xbf16>
    %20 = vector.shape_cast %19 : vector<1x16x16x16xbf16> to vector<16x16x16xbf16>
    %21 = vector.shape_cast %18 : vector<16x16x16xbf16> to vector<1x16x16x16xbf16>
    tpu.vector_store %arg7[%c0_9, %c0_10, %c0_11, %c0_12], %21 {strides = array<i32>} : memref<1x16x16x16xbf16, #tpu.memory_space<vmem>>, vector<1x16x16x16xbf16>,
    return
  }
  func.func @transform_0(%arg0: i32, %arg1: i32, %arg2: i32) -> (i32, i32, i32) {
    %c0_i32 = arith.constant 0 : i32
    %c0_i32_0 = arith.constant 0 : i32
    return %arg0, %arg1, %c0_i32 : i32, i32, i32
  }
  func.func @transform_1(%arg0: i32, %arg1: i32, %arg2: i32) -> (i32, i32, i32) {
    %c0_i32 = arith.constant 0 : i32
    %c0_i32_0 = arith.constant 0 : i32
    return %arg0, %arg2, %c0_i32 : i32, i32, i32
  }
  func.func @transform_2(%arg0: i32, %arg1: i32, %arg2: i32) -> (i32, i32) {
    %c0_i32 = arith.constant 0 : i32
    %c0_i32_0 = arith.constant 0 : i32
    %c0_i32_1 = arith.constant 0 : i32
    return %c0_i32, %c0_i32_0 : i32, i32
  }
  func.func @transform_3(%arg0: i32, %arg1: i32, %arg2: i32) -> (i32, i32) {
    %c0_i32 = arith.constant 0 : i32
    %c0_i32_0 = arith.constant 0 : i32
    %c0_i32_1 = arith.constant 0 : i32
    return %c0_i32, %c0_i32_0 : i32, i32
  }
  func.func @transform_4(%arg0: i32, %arg1: i32, %arg2: i32) -> (i32, i32, i32, i32) {
    %c0_i32 = arith.constant 0 : i32
    %c0_i32_0 = arith.constant 0 : i32
    return %arg0, %arg1, %arg2, %c0_i32 : i32, i32, i32, i32
  }
}

</mosaic_0001>

<bundles_post_ra>
// kernel: joint_network_forward.1
= control target key start
LH: loop header
LB: loop body
LE: loop exit
PB: predicated region body
PF: predicated region fallthrough
CT: control target
= control target key end

     0   :  { %s1797_s15 = smov 0   ;;  %s1799_s16 = smov 0   ;;  %s2140_s0 = inlined_call_operand.vmem [shape: bf16[2,16,256], index: 0, kind: input, shape index: {}]   ;;  %s2141_s1 = inlined_call_operand.vmem [shape: bf16[2,16,256], index: 1, kind: input, shape index: {}]   ;;  %s2142_s2 = inlined_call_operand.vmem [shape: bf16[256,128], index: 2, kind: input, shape index: {}]   ;;  %s2143_s3 = inlined_call_operand.vmem [shape: f32[1,128], index: 3, kind: input, shape index: {}]   ;;  %s2144_s4 = inlined_call_operand.vmem [shape: bf16[2,16,16,16], index: 4, kind: output, shape index: {}]  }
   0x1   :  { %s1801_s17 = smov 0  }
   0x2 LB: > { %s33_s18 = sadd.s32 1, %s1765_s16  ;;  %p1406_p0 = scmp.ge.s32.totalorder %s1769_s17, 1  ;;  %s1769_s17 = sphi %s1801_s17, %s14_s17   ;;  %s1765_s16 = sphi %s1799_s16, %s2146_s16   ;;  %s1761_s15 = sphi %s1797_s15, %s2145_s15  }
   0x3   : > { %p35_p1 = scmp.ge.s32.totalorder %s33_s18, 2  ;;  %p211_p2 = scmp.lt.s32.totalorder %s1769_s17, 3 }
   0x5   : > { %s2148_s18 = smov (%p35_p1, %s33_s18), 0  ;;  %p212_p3 = pnand %p1406_p0, %p211_p2 }
   0x6   : > { %v1664_v0 = vld [vmem:[%s2142_s2 + $0x40] sm:$0xff] (!%p212_p3)   ;;  %v1666_v2 = vld [vmem:[%s2142_s2 + $0x48] sm:$0xff] (!%p212_p3)   ;;  %v1668_v4 = vld [vmem:[%s2142_s2 + $0x50] sm:$0xff] (!%p212_p3)   ;;  %p262_p4 = scmp.lt.s32.totalorder (!%p212_p3), %s1761_s15, 1  ;;  %v317_v9 = vlaneseq (!%p212_p3)  ;;  %v1771_v12 = vmov (!%p212_p3), 1966171168  }
   0x7   : > { %215 = sbr.rel (%p212_p3) target bundleno = 333 (0x14d), region = 36  ;;  %v1665_v1 = vld [vmem:[%s2142_s2] sm:$0xff] (!%p212_p3)   ;;  %1511 = vmatprep.subr.bf16.mxu0 (!%p212_p3), %v1664_v0  ;;  %1623 = vmatprep.subr.bf16.mxu1 (!%p212_p3), %v1664_v0  ;;  %v1667_v3 = vld [vmem:[%s2142_s2 + $0x8] sm:$0xff] (!%p212_p3)   ;;  %v1669_v5 = vld [vmem:[%s2142_s2 + $0x10] sm:$0xff] (!%p212_p3)   ;;  %v315_v13 = vunpack.c.l.s4 (!%p212_p3), %v1771_v12  ;;  %vm1236_vm0 = vcmask (!%p212_p3), 125952  }
   0x8   : > { %1512 = vmatpush3.bf16.msra.mxu0 (!%p212_p3), %v1665_v1  ;;  %1631 = vmatpush3.bf16.msra.mxu1 (!%p212_p3), %v1665_v1  ;;  %v1670_v6 = vld [vmem:[%s2142_s2 + $0x58] sm:$0xff] (!%p212_p3)   ;;  %v1672_v8 = vld [vmem:[%s2142_s2 + $0x60] sm:$0xff] (!%p212_p3)   ;;  %v1674_v11 = vld [vmem:[%s2142_s2 + $0x68] sm:$0xff] (!%p212_p3)   ;;  %v318_v14 = vshrl.u32 (!%p212_p3), %v317_v9, 7 }
   0x9   : > { %1513 = vmatprep.subr.bf16.mxu0 (!%p212_p3), %v1666_v2  ;;  %1624 = vmatprep.subr.bf16.mxu1 (!%p212_p3), %v1666_v2  ;;  %v1671_v7 = vld [vmem:[%s2142_s2 + $0x18] sm:$0xff] (!%p212_p3)   ;;  %v1673_v10 = vld [vmem:[%s2142_s2 + $0x20] sm:$0xff] (!%p212_p3)   ;;  %v1675_v15 = vld [vmem:[%s2142_s2 + $0x28] sm:$0xff] (!%p212_p3)   ;;  %v316_v17 = vunpack.c.0.s8 (!%p212_p3), %v315_v13 }
   0xa   : > { %v1676_v16 = vld [vmem:[%s2142_s2 + $0x70] sm:$0xff] (!%p212_p3)   ;;  %v1678_v21 = vld [vmem:[%s2142_s2 + $0x78] sm:$0xff] (!%p212_p3)   ;;  %v1874_v24 = vsub.s32 (!%p212_p3), 0, %v318_v14  ;;  %v1876_v25 = vsub.s32 (!%p212_p3), 1, %v318_v14 }
   0xb   : > { %v319_v19 = vsub.s32 (!%p212_p3), %v316_v17, %v318_v14  ;;  %v1677_v20 = vld [vmem:[%s2142_s2 + $0x30] sm:$0xff] (!%p212_p3)   ;;  %v1679_v26 = vld [vmem:[%s2142_s2 + $0x38] sm:$0xff] (!%p212_p3)  }
   0xc   : > { %1514 = vmatpush3.bf16.msra.mxu0 (!%p212_p3), %v1667_v3  ;;  %1632 = vmatpush3.bf16.msra.mxu1 (!%p212_p3), %v1667_v3 }
   0xd   : > { %1515 = vmatprep.subr.bf16.mxu0 (!%p212_p3), %v1668_v4  ;;  %1625 = vmatprep.subr.bf16.mxu1 (!%p212_p3), %v1668_v4 }
   0xe   : > { %s2150_s15 = smov (!%p262_p4, %s1761_s15), 1 }
   0xf   : > { %s1476_s11 = sshll.u32 %s2150_s15, 4  ;;  %s1478_s12 = sshll.u32 %s2150_s15, 7 }
  0x10   : > { %1516 = vmatpush3.bf16.msra.mxu0 %v1669_v5  ;;  %1633 = vmatpush3.bf16.msra.mxu1 %v1669_v5  ;;  %s1851_s20 = scalar_lea.vmem %s2141_s1, %s1476_s11  ;;  %s1859_s25 = scalar_lea.vmem %s2140_s0, %s1476_s11 }
  0x11   : > { %1517 = vmatprep.subr.bf16.mxu0 %v1670_v6  ;;  %1626 = vmatprep.subr.bf16.mxu1 %v1670_v6  ;;  %v1413_v18 = vld.sshfl [vmem:[%s1859_s25] sm:$0xff pattern:$0x75316420]  ;;  %v1414_v34 = vld.sshfl [vmem:[%s1859_s25 + $0x8] sm:$0xff pattern:$0x75316420]  ;;  %s2034_s19 = scalar_lea.vmem %s2144_s4, %s1478_s12 }
  0x12   : > { %v320_v22 = vrot.slane %v1413_v18, %v319_v19  ;;  %v313_v35 = vcombine.high %v1413_v18, %v1413_v18  ;;  %v1889_v40 = vld [vmem:[%s1851_s20] ss:$8 sps:$4 sm:$0xff]   ;;  %v1892_v41 = vld [vmem:[%s1851_s20 + $0x4] ss:$8 sps:$4 sm:$0xff]   ;;  %v344_v42 = vrot.slane %v1414_v34, %v319_v19  ;;  %v337_v44 = vcombine.high %v1414_v34, %v1414_v34 }
  0x14   : > { %1518 = vmatpush3.bf16.msra.mxu0 %v1671_v7  ;;  %1634 = vmatpush3.bf16.msra.mxu1 %v1671_v7  ;;  %v355_v23 = vunpack.i.h.s16 %v320_v22  ;;  %v1415_v27 = vpack.i.b16 %v320_v22, %v320_v22  ;;  %v327_v45 = vrot.slane %v313_v35, %v319_v19  ;;  %v363_v47 = vunpack.i.h.s16 %v344_v42 }
  0x15   : > { %1519 = vmatprep.subr.bf16.mxu0 %v1672_v8  ;;  %1627 = vmatprep.subr.bf16.mxu1 %v1672_v8  ;;  %v351_v52 = vrot.slane %v337_v44, %v319_v19  ;;  %v1419_v53 = vpack.i.b16 %v344_v42, %v344_v42  ;;  %v328_v57 = vcombine.high %v320_v22, %v320_v22 }
  0x16   : > { %v371_v28 = vpack.i.b16 %v355_v23, %v355_v23  ;;  %v389_v29 = vrot.slane %v1415_v27, %v1874_v24  ;;  %v393_v30 = vrot.slane %v1415_v27, %v1876_v25  ;;  %v357_v48 = vunpack.i.h.s16 %v327_v45 }
  0x17   : > { %v1416_v54 = vpack.i.b16 %v327_v45, %v327_v45  ;;  %v379_v56 = vpack.i.b16 %v363_v47, %v363_v47  ;;  %v353_v59 = vcombine.high %v351_v52, %v351_v52  ;;  %v453_v60 = vrot.slane %v1419_v53, %v1874_v24 }
  0x18   : > { %1520 = vmatpush3.bf16.msra.mxu0 %v1673_v10  ;;  %1635 = vmatpush3.bf16.msra.mxu1 %v1673_v10  ;;  %v401_v31 = vrot.slane %v371_v28, %v1876_v25  ;;  %v515_v32 = vpack.i.b16 %v389_v29, %v389_v29  ;;  %v522_v33 = vpack.i.b16 %v393_v30, %v393_v30  ;;  %v365_v13 = vunpack.i.h.s16 %v351_v52 }
  0x19   : > { %1521 = vmatprep.subr.bf16.mxu0 %v1674_v11  ;;  %1628 = vmatprep.subr.bf16.mxu1 %v1674_v11  ;;  %v397_v36 = vrot.slane %v371_v28, %v1874_v24  ;;  %v373_v58 = vpack.i.b16 %v357_v48, %v357_v48  ;;  %v457_v61 = vrot.slane %v1419_v53, %v1876_v25  ;;  %v369_v1 = vunpack.i.h.s16 %v353_v59 }
  0x1a   : > { %v536_v37 = vpack.i.b16 %v401_v31, %v401_v31  ;;  %v520_v38 = vrot.slane %v515_v32, %v1874_v24  ;;  %v527_v39 = vrot.slane %v522_v33, %v1874_v24  ;;  %v465_v62 = vrot.slane %v379_v56, %v1876_v25 }
  0x1b   : > { %v529_v46 = vpack.i.b16 %v397_v36, %v397_v36  ;;  %v409_v63 = vrot.slane %v1416_v54, %v1876_v25  ;;  %v1420_v2 = vpack.i.b16 %v351_v52, %v351_v52  ;;  %v1904_v3 = vcombine.high %v327_v45, %v327_v45 }
  0x1c   : > { %1522 = vmatpush3.bf16.msra.mxu0 %v1675_v15  ;;  %1636 = vmatpush3.bf16.msra.mxu1 %v1675_v15  ;;  %v541_v43 = vrot.slane %v536_v37, %v1874_v24  ;;  %v748_v49 = vadd.bf16 %v1889_v40, %v520_v38  ;;  %v749_v50 = vadd.bf16 %v1892_v41, %v527_v39  ;;  %v359_v11 = vunpack.i.h.s16 %v328_v57 }
  0x1d   : > { %1523 = vmatprep.subr.bf16.mxu0 %v1676_v16  ;;  %1629 = vmatprep.subr.bf16.mxu1 %v1676_v16  ;;  %v534_v55 = vrot.slane %v529_v46, %v1874_v24  ;;  %v1417_v4 = vpack.i.b16 %v328_v57, %v328_v57  ;;  %v405_v5 = vrot.slane %v1416_v54, %v1874_v24 }
  0x1e   : > { %v751_v51 = vadd.bf16 %v1892_v41, %v541_v43  ;;  %1683 = vtanh.bf16 %v748_v49  ;;  %v417_v6 = vrot.slane %v373_v58, %v1876_v25  ;;  %v461_v7 = vrot.slane %v379_v56, %v1874_v24 }
  0x1f   : > { %1685 = vtanh.bf16 %v749_v50  ;;  %v750_v0 = vadd.bf16 %v1889_v40, %v534_v55  ;;  %v627_v8 = vpack.i.b16 %v453_v60, %v453_v60  ;;  %v634_v9 = vpack.i.b16 %v457_v61, %v457_v61 }
  0x20   : > { %1524 = vmatpush3.bf16.msra.mxu0 %v1677_v20  ;;  %1637 = vmatpush3.bf16.msra.mxu1 %v1677_v20  ;;  %1687 = vtanh.bf16 %v751_v51  ;;  %v648_v10 = vpack.i.b16 %v465_v62, %v465_v62  ;;  %v550_v12 = vpack.i.b16 %v409_v63, %v409_v63  ;;  %v413_v14 = vrot.slane %v373_v58, %v1874_v24 }
  0x21   : > { %1525 = vmatprep.subr.bf16.mxu0 %v1678_v21  ;;  %1630 = vmatprep.subr.bf16.mxu1 %v1678_v21  ;;  %1689 = vtanh.bf16 %v750_v0  ;;  %v1910_v15 = vpack.i.b16 %v353_v59, %v353_v59  ;;  %v385_v16 = vpack.i.b16 %v369_v1, %v369_v1  ;;  %v473_v17 = vrot.slane %v1420_v2, %v1876_v25 }
  0x22   : > { %v543_v18 = vpack.i.b16 %v405_v5, %v405_v5  ;;  %v564_v19 = vpack.i.b16 %v417_v6, %v417_v6  ;;  %v632_v20 = vrot.slane %v627_v8, %v1874_v24  ;;  %v639_v21 = vrot.slane %v634_v9, %v1874_v24 }
  0x23   : > { %v425_v23 = vrot.slane %v1417_v4, %v1876_v25  ;;  %v641_v27 = vpack.i.b16 %v461_v7, %v461_v7  ;;  %v653_v28 = vrot.slane %v648_v10, %v1874_v24  ;;  %v1919_v30 = vpack.i.b16 %v359_v11, %v359_v11 }
  0x24   : > { %1526 = vmatpush3.bf16.msra.mxu0 %v1679_v26  ;;  %1638 = vmatpush3.bf16.msra.mxu1 %v1679_v26  ;;  %v1916_v26 = vcombine.high %v344_v42, %v344_v42  ;;  %v1923_v31 = vpack.i.b16 %v1904_v3, %v1904_v3  ;;  %v555_v32 = vrot.slane %v550_v12, %v1874_v24 }
  0x25   : > { %v381_v33 = vpack.i.b16 %v365_v13, %v365_v13  ;;  %v557_v34 = vpack.i.b16 %v413_v14, %v413_v14  ;;  %v501_v35 = vrot.slane %v1910_v15, %v1874_v24  ;;  %v513_v36 = vrot.slane %v385_v16, %v1876_v25 }
  0x26   : > { %v662_v37 = vpack.i.b16 %v473_v17, %v473_v17  ;;  %v548_v39 = vrot.slane %v543_v18, %v1874_v24  ;;  %v569_v42 = vrot.slane %v564_v19, %v1874_v24  ;;  %v764_v43 = vadd.bf16 %v1889_v40, %v632_v20 }
  0x27   : > { %v765_v44 = vadd.bf16 %v1892_v41, %v639_v21  ;;  %v578_v45 = vpack.i.b16 %v425_v23, %v425_v23  ;;  %v469_v46 = vrot.slane %v1420_v2, %v1874_v24  ;;  %v646_v47 = vrot.slane %v641_v27, %v1874_v24 }
  0x28   : > { %v767_v48 = vadd.bf16 %v1892_v41, %v653_v28  ;;  %v481_v49 = vrot.slane %v381_v33, %v1876_v25  ;;  %v509_v50 = vrot.slane %v385_v16, %v1874_v24  ;;  %1691 = vtanh.bf16 %v764_v43 }
  0x29   : > { %v1684_v22 = vpop.eup %1683  ;;  %v753_v51 = vadd.bf16 %v1892_v41, %v555_v32  ;;  %v667_v52 = vrot.slane %v662_v37, %v1874_v24  ;;  %v711_v53 = vpack.i.b16 %v501_v35, %v501_v35  ;;  %v732_v54 = vpack.i.b16 %v513_v36, %v513_v36 }
  0x2a   : > { %v1686_v29 = vpop.eup %1685  ;;  %1693 = vtanh.bf16 %v765_v44  ;;  %v421_v55 = vrot.slane %v1417_v4, %v1874_v24  ;;  %v433_v56 = vrot.slane %v1919_v30, %v1876_v25  ;;  %v562_v57 = vrot.slane %v557_v34, %v1874_v24 }
  0x2b   : > { %979 = vmatprep.mubr.bf16.mxu0 %v1686_v29  ;;  %v1688_v38 = vpop.eup %1687  ;;  %v752_v58 = vadd.bf16 %v1889_v40, %v548_v39  ;;  %v583_v60 = vrot.slane %v578_v45, %v1874_v24  ;;  %v1421_v61 = vpack.i.b16 %v1916_v26, %v1916_v26  ;;  %v766_v62 = vadd.bf16 %v1889_v40, %v646_v47 }
  0x2c   : > { %980 = vmatmul.mubr.bf16.vlgmr.msra.gmra.mrb[0].mxu0 %v1684_v22  ;;  %v1690_v59 = vpop.eup %1689  ;;  %1695 = vtanh.bf16 %v767_v48  ;;  %v655_v63 = vpack.i.b16 %v469_v46, %v469_v46  ;;  %v725_v0 = vpack.i.b16 %v509_v50, %v509_v50  ;;  %v755_v1 = vadd.bf16 %v1892_v41, %v569_v42 }
  0x2d   : > { %987 = vmatprep.mubr.bf16.mxu0 %v1688_v38  ;;  %1697 = vtanh.bf16 %v753_v51  ;;  %v676_v2 = vpack.i.b16 %v481_v49, %v481_v49  ;;  %v769_v4 = vadd.bf16 %v1892_v41, %v667_v52  ;;  %v1952_v5 = vrot.slane %v711_v53, %v1874_v24 }
  0x2e   : > { %v1955_v6 = vrot.slane %v732_v54, %v1874_v24  ;;  %v571_v7 = vpack.i.b16 %v421_v55, %v421_v55  ;;  %v592_v8 = vpack.i.b16 %v433_v56, %v433_v56  ;;  %v367_v9 = vunpack.i.h.s16 %v1916_v26 }
  0x2f   : > { %1699 = vtanh.bf16 %v752_v58  ;;  %v477_v10 = vrot.slane %v381_v33, %v1874_v24  ;;  %v776_v11 = vadd.bf16 %v1889_v40, %v1952_v5  ;;  %v660_v13 = vrot.slane %v655_v63, %v1874_v24 }
  0x30   : > { %1701 = vtanh.bf16 %v766_v62  ;;  %v779_v12 = vadd.bf16 %v1892_v41, %v1955_v6  ;;  %v754_v14 = vadd.bf16 %v1889_v40, %v562_v57  ;;  %v1966_v16 = vrot.slane %v725_v0, %v1874_v24  ;;  %v2027_v6 = vld [vmem:[%s2143_s3] ss:$0 sm:$0xff] }
  0x31   : > { %1703 = vtanh.bf16 %v755_v1  ;;  %v489_v17 = vrot.slane %v1421_v61, %v1876_v25  ;;  %v681_v18 = vrot.slane %v676_v2, %v1874_v24  ;;  %v757_v19 = vadd.bf16 %v1892_v41, %v583_v60 }
  0x32   : > { %1705 = vtanh.bf16 %v769_v4  ;;  %v778_v20 = vadd.bf16 %v1889_v40, %v1966_v16  ;;  %v361_v22 = vunpack.i.h.s16 %v1904_v3  ;;  %v429_v23 = vrot.slane %v1919_v30, %v1874_v24 }
  0x33   : > { %v1692_v21 = vpop.eup %1691  ;;  %v441_v26 = vrot.slane %v1923_v31, %v1876_v25  ;;  %v576_v27 = vrot.slane %v571_v7, %v1874_v24  ;;  %v597_v29 = vrot.slane %v592_v8, %v1874_v24  ;;  %v669_v32 = vpack.i.b16 %v477_v10, %v477_v10 }
  0x34   : > { %988 = vmatmul.mubr.bf16.gmra.mrb[4].mxu0 %v1690_v59  ;;  %v768_v33 = vadd.bf16 %v1889_v40, %v660_v13  ;;  %1707 = vtanh.bf16 %v754_v14  ;;  %v383_v34 = vpack.i.b16 %v367_v9, %v367_v9  ;;  %v690_v35 = vpack.i.b16 %v489_v17, %v489_v17 }
  0x35   : > { %v1694_v28 = vpop.eup %1693  ;;  %v771_v3 = vadd.bf16 %v1892_v41, %v681_v18  ;;  %1709 = vtanh.bf16 %v757_v19  ;;  %v377_v37 = vpack.i.b16 %v361_v22, %v361_v22  ;;  %v585_v38 = vpack.i.b16 %v429_v23, %v429_v23 }
  0x36   : > { %1043 = vmatprep.mubr.bf16.mxu1 %v1694_v28  ;;  %v606_v39 = vpack.i.b16 %v441_v26, %v441_v26  ;;  %v485_v42 = vrot.slane %v1421_v61, %v1874_v24  ;;  %v674_v43 = vrot.slane %v669_v32, %v1874_v24  ;;  %1711 = vtanh.bf16 %v768_v33 }
  0x37   : > { %v1696_v36 = vpop.eup %1695  ;;  %1044 = vmatmul.mubr.bf16.vlgmr.msra.gmra.mrb[0].mxu1 %v1692_v21  ;;  %v756_v44 = vadd.bf16 %v1889_v40, %v576_v27  ;;  %v497_v46 = vrot.slane %v383_v34, %v1876_v25  ;;  %v695_v47 = vrot.slane %v690_v35, %v1874_v24  ;;  %1713 = vtanh.bf16 %v771_v3 }
  0x38   : > { %v1698_v30 = vpop.eup %1697  ;;  %1051 = vmatprep.mubr.bf16.mxu1 %v1696_v36  ;;  %v759_v48 = vadd.bf16 %v1892_v41, %v597_v29  ;;  %v437_v51 = vrot.slane %v1923_v31, %v1874_v24  ;;  %v449_v52 = vrot.slane %v377_v37, %v1876_v25  ;;  %v590_v54 = vrot.slane %v585_v38, %v1874_v24 }
  0x39   : > { %995 = vmatprep.mubr.bf16.mxu0 %v1698_v30  ;;  %v683_v55 = vpack.i.b16 %v485_v42, %v485_v42  ;;  %v770_v56 = vadd.bf16 %v1889_v40, %v674_v43  ;;  %1715 = vtanh.bf16 %v756_v44  ;;  %v704_v57 = vpack.i.b16 %v497_v46, %v497_v46 }
  0x3a   : > { %v1700_v45 = vpop.eup %1699  ;;  %v773_v58 = vadd.bf16 %v1892_v41, %v695_v47  ;;  %1717 = vtanh.bf16 %v759_v48  ;;  %v611_v59 = vrot.slane %v606_v39, %v1874_v24  ;;  %v599_v61 = vpack.i.b16 %v437_v51, %v437_v51 }
  0x3b   : > { %v1702_v49 = vpop.eup %1701  ;;  %v620_v31 = vpack.i.b16 %v449_v52, %v449_v52  ;;  %v493_v63 = vrot.slane %v383_v34, %v1874_v24  ;;  %v688_v0 = vrot.slane %v683_v55, %v1874_v24  ;;  %1719 = vtanh.bf16 %v770_v56 }
  0x3c   : > { %996 = vmatmul.mubr.bf16.gmra.mrb[8].mxu0 %v1700_v45  ;;  %v1704_v50 = vpop.eup %1703  ;;  %v758_v1 = vadd.bf16 %v1889_v40, %v590_v54  ;;  %v505_v2 = vrot.slane %v1910_v15, %v1876_v25  ;;  %v709_v4 = vrot.slane %v704_v57, %v1874_v24  ;;  %1721 = vtanh.bf16 %v773_v58 }
  0x3d   : > { %v1706_v53 = vpop.eup %1705  ;;  %1003 = vmatprep.mubr.bf16.mxu0 %v1704_v50  ;;  %v761_v7 = vadd.bf16 %v1892_v41, %v611_v59  ;;  %v445_v9 = vrot.slane %v377_v37, %v1874_v24  ;;  %v697_v13 = vpack.i.b16 %v493_v63, %v493_v63  ;;  %v772_v14 = vadd.bf16 %v1889_v40, %v688_v0 }
  0x3e   : > { %1723 = vtanh.bf16 %v758_v1  ;;  %v604_v17 = vrot.slane %v599_v61, %v1874_v24  ;;  %v718_v18 = vpack.i.b16 %v505_v2, %v505_v2  ;;  %v775_v25 = vadd.bf16 %v1892_v41, %v709_v4 }
  0x3f   : > { %1052 = vmatmul.mubr.bf16.gmra.mrb[4].mxu1 %v1702_v49  ;;  %v1708_v60 = vpop.eup %1707  ;;  %1725 = vtanh.bf16 %v761_v7  ;;  %v625_v15 = vrot.slane %v620_v31, %v1874_v24  ;;  %v613_v22 = vpack.i.b16 %v445_v9, %v445_v9  ;;  %v702_v23 = vrot.slane %v697_v13, %v1874_v24 }
  0x40   : > { %1059 = vmatprep.mubr.bf16.mxu1 %v1706_v53  ;;  %v1710_v62 = vpop.eup %1709  ;;  %1727 = vtanh.bf16 %v772_v14  ;;  %v760_v26 = vadd.bf16 %v1889_v40, %v604_v17  ;;  %v723_v27 = vrot.slane %v718_v18, %v1874_v24 }
  0x41   : > { %v1712_v8 = vpop.eup %1711  ;;  %1729 = vtanh.bf16 %v775_v25  ;;  %v763_v28 = vadd.bf16 %v1892_v41, %v625_v15  ;;  %v774_v33 = vadd.bf16 %v1889_v40, %v702_v23  ;;  %v618_v34 = vrot.slane %v613_v22, %v1874_v24 }
  0x42   : > { %v1714_v10 = vpop.eup %1713  ;;  %1731 = vtanh.bf16 %v760_v26  ;;  %v777_v35 = vadd.bf16 %v1892_v41, %v723_v27 }
  0x43   : > { %1733 = vtanh.bf16 %v763_v28  ;;  %v762_v30 = vadd.bf16 %v1889_v40, %v618_v34 }
  0x44   : > { %1004 = vmatmul.mubr.bf16.gmra.mrb[12].mxu0 %v1708_v60  ;;  %v1716_v19 = vpop.eup %1715  ;;  %1735 = vtanh.bf16 %v774_v33 }
  0x45   : > { %1011 = vmatprep.mubr.bf16.mxu0 %v1710_v62  ;;  %v1718_v21 = vpop.eup %1717  ;;  %1737 = vtanh.bf16 %v777_v35 }
  0x46   : > { %v1720_v29 = vpop.eup %1719  ;;  %1739 = vtanh.bf16 %v762_v30 }
  0x47   : > { %1060 = vmatmul.mubr.bf16.gmra.mrb[8].mxu1 %v1712_v8  ;;  %v1722_v32 = vpop.eup %1721  ;;  %1741 = vtanh.bf16 %v776_v11 }
  0x48   : > { %1067 = vmatprep.mubr.bf16.mxu1 %v1714_v10  ;;  %1743 = vtanh.bf16 %v779_v12 }
  0x49   : > { %v1724_v3 = vpop.eup %1723  ;;  %1745 = vtanh.bf16 %v778_v20 }
  0x4a   : > { %v1726_v36 = vpop.eup %1725 }
  0x4b   : > { %v1728_v37 = vpop.eup %1727 }
  0x4c   : > { %1012 = vmatmul.mubr.bf16.gmra.mrb[16].mxu0 %v1716_v19  ;;  %v1730_v38 = vpop.eup %1729 }
  0x4d   : > { %1019 = vmatprep.mubr.bf16.mxu0 %v1718_v21  ;;  %v1732_v39 = vpop.eup %1731 }
  0x4e   : > { %v1734_v24 = vpop.eup %1733 }
  0x4f   : > { %1068 = vmatmul.mubr.bf16.gmra.mrb[12].mxu1 %v1720_v29  ;;  %v1736_v42 = vpop.eup %1735 }
  0x50   : > { %1075 = vmatprep.mubr.bf16.mxu1 %v1722_v32  ;;  %v1738_v43 = vpop.eup %1737 }
  0x51   : > { %v1740_v44 = vpop.eup %1739 }
  0x52   : > { %v1742_v45 = vpop.eup %1741 }
  0x53   : > { %v1744_v5 = vpop.eup %1743 }
  0x54   : > { %1020 = vmatmul.mubr.bf16.gmra.mrb[20].mxu0 %v1724_v3  ;;  %v1746_v11 = vpop.eup %1745 }
  0x55   : > { %1027 = vmatprep.mubr.bf16.mxu0 %v1726_v36 }
  0x57   : > { %1076 = vmatmul.mubr.bf16.gmra.mrb[16].mxu1 %v1728_v37 }
  0x58   : > { %1083 = vmatprep.mubr.bf16.mxu1 %v1730_v38 }
  0x5c   : > { %1028 = vmatmul.mubr.bf16.gmra.mrb[24].mxu0 %v1732_v39 }
  0x5d   : > { %1035 = vmatprep.mubr.bf16.mxu0 %v1734_v24 }
  0x5f   : > { %1084 = vmatmul.mubr.bf16.gmra.mrb[20].mxu1 %v1736_v42 }
  0x60   : > { %1091 = vmatprep.mubr.bf16.mxu1 %v1738_v43 }
  0x64   : > { %1036 = vmatmul.mubr.bf16.gmra.mrb[28].mxu0 %v1740_v44 }
  0x67   : > { %1092 = vmatmul.mubr.bf16.gmra.mrb[24].mxu1 %v1742_v45 }
  0x68   : > { %1099 = vmatprep.mubr.bf16.mxu1 %v1744_v5 }
  0x6f   : > { %1100 = vmatmul.mubr.bf16.gmra.mrb[28].mxu1 %v1746_v11 }
  0xff   : > { %v1527_v41 = vpop.f32.mrb[0].mxu0 }
 0x100   : > { %v1528_v12 = vpop.f32.mrb[1].mxu0 }
 0x101   : > { %v1529_v46 = vadd.f32 %v1528_v12, %v1527_v41  ;;  %v1530_v47 = vpop.f32.mrb[2].mxu0 }
 0x102   : > { %v1531_v48 = vpop.f32.mrb[3].mxu0 }
 0x103   : > { %v982_v40 = vadd.f32 %v1529_v46, %v2027_v6  ;;  %v1532_v16 = vadd.f32 %v1531_v48, %v1530_v47 }
 0x105   : > { %v1479_v20 = vpack.c.bf16 %v982_v40, %v982_v40  ;;  %v985_v49 = vadd.f32 %v1532_v16, %v2027_v6 }
 0x107   : > { %1237 = vst.msk [vmem:[%s2034_s19] sm:$0xf] %vm1236_vm0, %v1479_v20  ;;  %v1480_v50 = vpack.c.bf16 %v985_v49, %v985_v49  ;;  %v1533_v51 = vpop.f32.mrb[4].mxu0 }
 0x108   : > { %v1534_v52 = vpop.f32.mrb[5].mxu0 }
 0x109   : > { %1238 = vst.msk [vmem:[%s2034_s19 + $0x4] sm:$0xf] %vm1236_vm0, %v1480_v50  ;;  %v1535_v53 = vadd.f32 %v1534_v52, %v1533_v51  ;;  %v1536_v54 = vpop.f32.mrb[6].mxu0 }
 0x10a   : > { %v1537_v55 = vpop.f32.mrb[7].mxu0  ;;  %v1575_v60 = vpop.f32.mrb[0].mxu1 }
 0x10b   : > { %v990_v56 = vadd.f32 %v1535_v53, %v2027_v6  ;;  %v1538_v57 = vadd.f32 %v1537_v55, %v1536_v54  ;;  %v1576_v31 = vpop.f32.mrb[1].mxu1 }
 0x10c   : > { %v1577_v62 = vadd.f32 %v1576_v31, %v1575_v60  ;;  %v1578_v63 = vpop.f32.mrb[2].mxu1 }
 0x10d   : > { %v1481_v58 = vpack.c.bf16 %v990_v56, %v990_v56  ;;  %v993_v59 = vadd.f32 %v1538_v57, %v2027_v6  ;;  %v1579_v0 = vpop.f32.mrb[3].mxu1 }
 0x10e   : > { %v1046_v1 = vadd.f32 %v1577_v62, %v2027_v6  ;;  %v1580_v2 = vadd.f32 %v1579_v0, %v1578_v63 }
 0x10f   : > { %1239 = vst.msk [vmem:[%s2034_s19 + $0x8] sm:$0xf] %vm1236_vm0, %v1481_v58  ;;  %v1482_v61 = vpack.c.bf16 %v993_v59, %v993_v59  ;;  %v1539_v4 = vpop.f32.mrb[8].mxu0 }
 0x110   : > { %v1540_v7 = vpop.f32.mrb[9].mxu0  ;;  %v1495_v8 = vpack.c.bf16 %v1046_v1, %v1046_v1  ;;  %v1049_v9 = vadd.f32 %v1580_v2, %v2027_v6 }
 0x111   : > { %1240 = vst.msk [vmem:[%s2034_s19 + $0xc] sm:$0xf] %vm1236_vm0, %v1482_v61  ;;  %v1541_v10 = vadd.f32 %v1540_v7, %v1539_v4  ;;  %v1542_v13 = vpop.f32.mrb[10].mxu0 }
 0x112   : > { %v1543_v14 = vpop.f32.mrb[11].mxu0  ;;  %1253 = vst.msk [vmem:[%s2034_s19 + $0x40] sm:$0xf] %vm1236_vm0, %v1495_v8  ;;  %v1496_v17 = vpack.c.bf16 %v1049_v9, %v1049_v9  ;;  %v1581_v18 = vpop.f32.mrb[4].mxu1 }
 0x113   : > { %v998_v25 = vadd.f32 %v1541_v10, %v2027_v6  ;;  %v1544_v15 = vadd.f32 %v1543_v14, %v1542_v13  ;;  %v1582_v19 = vpop.f32.mrb[5].mxu1 }
 0x114   : > { %1254 = vst.msk [vmem:[%s2034_s19 + $0x44] sm:$0xf] %vm1236_vm0, %v1496_v17  ;;  %v1583_v21 = vadd.f32 %v1582_v19, %v1581_v18  ;;  %v1584_v22 = vpop.f32.mrb[6].mxu1 }
 0x115   : > { %v1483_v23 = vpack.c.bf16 %v998_v25, %v998_v25  ;;  %v1001_v26 = vadd.f32 %v1544_v15, %v2027_v6  ;;  %v1585_v27 = vpop.f32.mrb[7].mxu1 }
 0x116   : > { %v1054_v28 = vadd.f32 %v1583_v21, %v2027_v6  ;;  %v1586_v29 = vadd.f32 %v1585_v27, %v1584_v22 }
 0x117   : > { %1241 = vst.msk [vmem:[%s2034_s19 + $0x10] sm:$0xf] %vm1236_vm0, %v1483_v23  ;;  %v1484_v32 = vpack.c.bf16 %v1001_v26, %v1001_v26  ;;  %v1545_v33 = vpop.f32.mrb[12].mxu0 }
 0x118   : > { %v1546_v34 = vpop.f32.mrb[13].mxu0  ;;  %v1497_v35 = vpack.c.bf16 %v1054_v28, %v1054_v28  ;;  %v1057_v3 = vadd.f32 %v1586_v29, %v2027_v6 }
 0x119   : > { %1242 = vst.msk [vmem:[%s2034_s19 + $0x14] sm:$0xf] %vm1236_vm0, %v1484_v32  ;;  %v1547_v36 = vadd.f32 %v1546_v34, %v1545_v33  ;;  %v1548_v30 = vpop.f32.mrb[14].mxu0 }
 0x11a   : > { %v1549_v37 = vpop.f32.mrb[15].mxu0  ;;  %1255 = vst.msk [vmem:[%s2034_s19 + $0x48] sm:$0xf] %vm1236_vm0, %v1497_v35  ;;  %v1498_v38 = vpack.c.bf16 %v1057_v3, %v1057_v3  ;;  %v1587_v39 = vpop.f32.mrb[8].mxu1 }
 0x11b   : > { %v1006_v24 = vadd.f32 %v1547_v36, %v2027_v6  ;;  %v1550_v42 = vadd.f32 %v1549_v37, %v1548_v30  ;;  %v1588_v43 = vpop.f32.mrb[9].mxu1 }
 0x11c   : > { %1256 = vst.msk [vmem:[%s2034_s19 + $0x4c] sm:$0xf] %vm1236_vm0, %v1498_v38  ;;  %v1589_v44 = vadd.f32 %v1588_v43, %v1587_v39  ;;  %v1590_v45 = vpop.f32.mrb[10].mxu1 }
 0x11d   : > { %v1485_v5 = vpack.c.bf16 %v1006_v24, %v1006_v24  ;;  %v1009_v11 = vadd.f32 %v1550_v42, %v2027_v6  ;;  %v1591_v41 = vpop.f32.mrb[11].mxu1 }
 0x11e   : > { %v1062_v12 = vadd.f32 %v1589_v44, %v2027_v6  ;;  %v1592_v46 = vadd.f32 %v1591_v41, %v1590_v45 }
 0x11f   : > { %1243 = vst.msk [vmem:[%s2034_s19 + $0x18] sm:$0xf] %vm1236_vm0, %v1485_v5  ;;  %v1486_v47 = vpack.c.bf16 %v1009_v11, %v1009_v11  ;;  %v1551_v48 = vpop.f32.mrb[16].mxu0 }
 0x120   : > { %v1552_v40 = vpop.f32.mrb[17].mxu0  ;;  %v1499_v16 = vpack.c.bf16 %v1062_v12, %v1062_v12  ;;  %v1065_v20 = vadd.f32 %v1592_v46, %v2027_v6 }
 0x121   : > { %1244 = vst.msk [vmem:[%s2034_s19 + $0x1c] sm:$0xf] %vm1236_vm0, %v1486_v47  ;;  %v1553_v49 = vadd.f32 %v1552_v40, %v1551_v48  ;;  %v1554_v50 = vpop.f32.mrb[18].mxu0 }
 0x122   : > { %v1555_v51 = vpop.f32.mrb[19].mxu0  ;;  %1257 = vst.msk [vmem:[%s2034_s19 + $0x50] sm:$0xf] %vm1236_vm0, %v1499_v16  ;;  %v1500_v52 = vpack.c.bf16 %v1065_v20, %v1065_v20  ;;  %v1593_v53 = vpop.f32.mrb[12].mxu1 }
 0x123   : > { %v1014_v54 = vadd.f32 %v1553_v49, %v2027_v6  ;;  %v1556_v55 = vadd.f32 %v1555_v51, %v1554_v50  ;;  %v1594_v56 = vpop.f32.mrb[13].mxu1 }
 0x124   : > { %1258 = vst.msk [vmem:[%s2034_s19 + $0x54] sm:$0xf] %vm1236_vm0, %v1500_v52  ;;  %v1595_v57 = vadd.f32 %v1594_v56, %v1593_v53  ;;  %v1596_v58 = vpop.f32.mrb[14].mxu1 }
 0x125   : > { %v1487_v59 = vpack.c.bf16 %v1014_v54, %v1014_v54  ;;  %v1017_v60 = vadd.f32 %v1556_v55, %v2027_v6  ;;  %v1597_v61 = vpop.f32.mrb[15].mxu1 }
 0x126   : > { %v1070_v31 = vadd.f32 %v1595_v57, %v2027_v6  ;;  %v1598_v62 = vadd.f32 %v1597_v61, %v1596_v58 }
 0x127   : > { %1245 = vst.msk [vmem:[%s2034_s19 + $0x20] sm:$0xf] %vm1236_vm0, %v1487_v59  ;;  %v1488_v63 = vpack.c.bf16 %v1017_v60, %v1017_v60  ;;  %v1557_v0 = vpop.f32.mrb[20].mxu0 }
 0x128   : > { %v1558_v1 = vpop.f32.mrb[21].mxu0  ;;  %v1501_v2 = vpack.c.bf16 %v1070_v31, %v1070_v31  ;;  %v1073_v4 = vadd.f32 %v1598_v62, %v2027_v6 }
 0x129   : > { %1246 = vst.msk [vmem:[%s2034_s19 + $0x24] sm:$0xf] %vm1236_vm0, %v1488_v63  ;;  %v1559_v7 = vadd.f32 %v1558_v1, %v1557_v0  ;;  %v1560_v8 = vpop.f32.mrb[22].mxu0 }
 0x12a   : > { %v1561_v9 = vpop.f32.mrb[23].mxu0  ;;  %1259 = vst.msk [vmem:[%s2034_s19 + $0x58] sm:$0xf] %vm1236_vm0, %v1501_v2  ;;  %v1502_v10 = vpack.c.bf16 %v1073_v4, %v1073_v4  ;;  %v1599_v13 = vpop.f32.mrb[16].mxu1 }
 0x12b   : > { %v1022_v14 = vadd.f32 %v1559_v7, %v2027_v6  ;;  %v1562_v17 = vadd.f32 %v1561_v9, %v1560_v8  ;;  %v1600_v18 = vpop.f32.mrb[17].mxu1 }
 0x12c   : > { %1260 = vst.msk [vmem:[%s2034_s19 + $0x5c] sm:$0xf] %vm1236_vm0, %v1502_v10  ;;  %v1601_v25 = vadd.f32 %v1600_v18, %v1599_v13  ;;  %v1602_v15 = vpop.f32.mrb[18].mxu1 }
 0x12d   : > { %v1489_v19 = vpack.c.bf16 %v1022_v14, %v1022_v14  ;;  %v1025_v21 = vadd.f32 %v1562_v17, %v2027_v6  ;;  %v1603_v22 = vpop.f32.mrb[19].mxu1 }
 0x12e   : > { %v1078_v23 = vadd.f32 %v1601_v25, %v2027_v6  ;;  %v1604_v26 = vadd.f32 %v1603_v22, %v1602_v15 }
 0x12f   : > { %1247 = vst.msk [vmem:[%s2034_s19 + $0x28] sm:$0xf] %vm1236_vm0, %v1489_v19  ;;  %v1490_v27 = vpack.c.bf16 %v1025_v21, %v1025_v21  ;;  %v1563_v28 = vpop.f32.mrb[24].mxu0 }
 0x130   : > { %v1564_v29 = vpop.f32.mrb[25].mxu0  ;;  %v1503_v32 = vpack.c.bf16 %v1078_v23, %v1078_v23  ;;  %v1081_v33 = vadd.f32 %v1604_v26, %v2027_v6 }
 0x131   : > { %1248 = vst.msk [vmem:[%s2034_s19 + $0x2c] sm:$0xf] %vm1236_vm0, %v1490_v27  ;;  %v1565_v34 = vadd.f32 %v1564_v29, %v1563_v28  ;;  %v1566_v35 = vpop.f32.mrb[26].mxu0 }
 0x132   : > { %v1567_v3 = vpop.f32.mrb[27].mxu0  ;;  %1261 = vst.msk [vmem:[%s2034_s19 + $0x60] sm:$0xf] %vm1236_vm0, %v1503_v32  ;;  %v1504_v36 = vpack.c.bf16 %v1081_v33, %v1081_v33  ;;  %v1605_v30 = vpop.f32.mrb[20].mxu1 }
 0x133   : > { %v1030_v37 = vadd.f32 %v1565_v34, %v2027_v6  ;;  %v1568_v38 = vadd.f32 %v1567_v3, %v1566_v35  ;;  %v1606_v39 = vpop.f32.mrb[21].mxu1 }
 0x134   : > { %1262 = vst.msk [vmem:[%s2034_s19 + $0x64] sm:$0xf] %vm1236_vm0, %v1504_v36  ;;  %v1607_v24 = vadd.f32 %v1606_v39, %v1605_v30  ;;  %v1608_v42 = vpop.f32.mrb[22].mxu1 }
 0x135   : > { %v1491_v43 = vpack.c.bf16 %v1030_v37, %v1030_v37  ;;  %v1033_v44 = vadd.f32 %v1568_v38, %v2027_v6  ;;  %v1609_v45 = vpop.f32.mrb[23].mxu1 }
 0x136   : > { %v1086_v5 = vadd.f32 %v1607_v24, %v2027_v6  ;;  %v1610_v11 = vadd.f32 %v1609_v45, %v1608_v42 }
 0x137   : > { %1249 = vst.msk [vmem:[%s2034_s19 + $0x30] sm:$0xf] %vm1236_vm0, %v1491_v43  ;;  %v1492_v41 = vpack.c.bf16 %v1033_v44, %v1033_v44  ;;  %v1569_v12 = vpop.f32.mrb[28].mxu0 }
 0x138   : > { %v1570_v46 = vpop.f32.mrb[29].mxu0  ;;  %v1505_v47 = vpack.c.bf16 %v1086_v5, %v1086_v5  ;;  %v1089_v48 = vadd.f32 %v1610_v11, %v2027_v6 }
 0x139   : > { %1250 = vst.msk [vmem:[%s2034_s19 + $0x34] sm:$0xf] %vm1236_vm0, %v1492_v41  ;;  %v1571_v40 = vadd.f32 %v1570_v46, %v1569_v12  ;;  %v1572_v16 = vpop.f32.mrb[30].mxu0 }
 0x13a   : > { %v1573_v20 = vpop.f32.mrb[31].mxu0  ;;  %1263 = vst.msk [vmem:[%s2034_s19 + $0x68] sm:$0xf] %vm1236_vm0, %v1505_v47  ;;  %v1506_v49 = vpack.c.bf16 %v1089_v48, %v1089_v48  ;;  %v1611_v50 = vpop.f32.mrb[24].mxu1 }
 0x13b   : > { %v1038_v51 = vadd.f32 %v1571_v40, %v2027_v6  ;;  %v1574_v52 = vadd.f32 %v1573_v20, %v1572_v16  ;;  %v1612_v53 = vpop.f32.mrb[25].mxu1 }
 0x13c   : > { %1264 = vst.msk [vmem:[%s2034_s19 + $0x6c] sm:$0xf] %vm1236_vm0, %v1506_v49  ;;  %v1613_v54 = vadd.f32 %v1612_v53, %v1611_v50  ;;  %v1614_v55 = vpop.f32.mrb[26].mxu1 }
 0x13d   : > { %v1493_v56 = vpack.c.bf16 %v1038_v51, %v1038_v51  ;;  %v1041_v57 = vadd.f32 %v1574_v52, %v2027_v6  ;;  %v1615_v58 = vpop.f32.mrb[27].mxu1 }
 0x13e   : > { %v1094_v59 = vadd.f32 %v1613_v54, %v2027_v6  ;;  %v1616_v60 = vadd.f32 %v1615_v58, %v1614_v55 }
 0x13f   : > { %1251 = vst.msk [vmem:[%s2034_s19 + $0x38] sm:$0xf] %vm1236_vm0, %v1493_v56  ;;  %v1494_v61 = vpack.c.bf16 %v1041_v57, %v1041_v57 }
 0x140   : > { %v1507_v31 = vpack.c.bf16 %v1094_v59, %v1094_v59  ;;  %v1097_v62 = vadd.f32 %v1616_v60, %v2027_v6 }
 0x141   : > { %1252 = vst.msk [vmem:[%s2034_s19 + $0x3c] sm:$0xf] %vm1236_vm0, %v1494_v61 }
 0x142   : > { %1265 = vst.msk [vmem:[%s2034_s19 + $0x70] sm:$0xf] %vm1236_vm0, %v1507_v31  ;;  %v1508_v63 = vpack.c.bf16 %v1097_v62, %v1097_v62  ;;  %v1617_v0 = vpop.f32.mrb[28].mxu1 }
 0x143   : > { %v1618_v1 = vpop.f32.mrb[29].mxu1 }
 0x144   : > { %1266 = vst.msk [vmem:[%s2034_s19 + $0x74] sm:$0xf] %vm1236_vm0, %v1508_v63  ;;  %v1619_v2 = vadd.f32 %v1618_v1, %v1617_v0  ;;  %v1620_v4 = vpop.f32.mrb[30].mxu1 }
 0x145   : > { %v1621_v7 = vpop.f32.mrb[31].mxu1 }
 0x146   : > { %v1102_v8 = vadd.f32 %v1619_v2, %v2027_v6  ;;  %v1622_v9 = vadd.f32 %v1621_v7, %v1620_v4 }
 0x148   : > { %v1509_v10 = vpack.c.bf16 %v1102_v8, %v1102_v8  ;;  %v1105_v13 = vadd.f32 %v1622_v9, %v2027_v6 }
 0x14a   : > { %1267 = vst.msk [vmem:[%s2034_s19 + $0x78] sm:$0xf] %vm1236_vm0, %v1509_v10  ;;  %v1510_v14 = vpack.c.bf16 %v1105_v13, %v1105_v13 }
 0x14c   : > { %1268 = vst.msk [vmem:[%s2034_s19 + $0x7c] sm:$0xf] %vm1236_vm0, %v1510_v14 }
 0x14d PF: > { %s14_s17 = sadd.s32 1, %s1769_s17   ;;  %s2145_s15 = smov %s1765_s16 }
 0x14e   : > { %p11_p5 = scmp.ge.s32.totalorder %s14_s17, 4   ;;  %s2146_s16 = smov %s2148_s18 }
 0x150   :  { %13 = sbr.rel (!%p11_p5) target bundleno = 2 (0x2), region = 69 }

</bundles_post_ra>
